<compile_context>
chip_gen: v7x
topology: tpu7x:2x2x1
jax: 0.10.0
libtpu: 0.0.40
codegen_flags: <defaults>
</compile_context>

<pallas_src>
import functools

import jax
import jax.numpy as jnp
from jax.experimental import pallas as pl
from jax.experimental.pallas import tpu as pltpu

WIDTH = 28
IN_FEATURES = WIDTH * WIDTH      # 784
NUM_CLASSES = 10

LANE = 128                       # lane width: pad last dims to multiples of this
IN_PAD = 896                     # 7 * 128 >= 784 (clean MXU K tiling, unmasked vld)
OUT_PAD = 128                    # lane-dense logits slab; cols 0..9 are real classes
MAX_TILE_B = 256                 # batch tile (multiple of 8 f32 sublanes)


def _round_up(n, m):
    return ((n + m - 1) // m) * m


def _mlp_kernel(x_ref, w1_ref, b1_ref, w2_ref, b2_ref, w3_ref, b3_ref, out_ref):
    """One batch tile of the fused MLP + masked log_softmax.

    x_ref:   (TILE_B, IN_PAD)   f32
    w1_ref:  (IN_PAD, H_pad)    f32/bf16     b1_ref: (1, H_pad)   f32
    w2_ref:  (H_pad, H_pad)     f32/bf16     b2_ref: (1, H_pad)   f32
    w3_ref:  (H_pad, OUT_PAD)   f32/bf16     b3_ref: (1, OUT_PAD) f32
    out_ref: (TILE_B, OUT_PAD)  f32  log-probs (padded class cols are -inf)
    """
    w1 = w1_ref[...]
    x = x_ref[...].astype(w1.dtype)

    # Layer 1: Linear(784 -> H) + ReLU   (Dropout is identity in eval)
    h = jnp.dot(x, w1, preferred_element_type=jnp.float32) + b1_ref[...]
    h = jnp.maximum(h, 0.0)

    # Layer 2: Linear(H -> H) + ReLU
    w2 = w2_ref[...]
    h = jnp.dot(h.astype(w2.dtype), w2, preferred_element_type=jnp.float32) + b2_ref[...]
    h = jnp.maximum(h, 0.0)

    # Layer 3: Linear(H -> 10), computed over the 128-wide padded class slab
    w3 = w3_ref[...]
    z = jnp.dot(h.astype(w3.dtype), w3, preferred_element_type=jnp.float32) + b3_ref[...]

    # Mask the zero-padded class columns so they don't perturb softmax stats.
    col = jax.lax.broadcasted_iota(jnp.int32, z.shape, 1)
    z = jnp.where(col < NUM_CLASSES, z, -jnp.inf)

    # log_softmax over classes (dim=1); padded cols come out as -inf and are
    # sliced off in the wrapper.
    z_max = jnp.max(z, axis=1, keepdims=True)
    z_shift = z - z_max
    lse = jnp.log(jnp.sum(jnp.exp(z_shift), axis=1, keepdims=True))
    out_ref[...] = z_shift - lse


@functools.partial(jax.jit, static_argnames=("param_dtype",))
def simple_classifier_forward(x, w1, b1, w2, b2, w3, b3, *, param_dtype=jnp.float32):
    """x: (B, 1, 28, 28) float32 (NCHW). Returns {'logits': (B,10), 'preds': (B,)}."""
    B = x.shape[0]
    H = w1.shape[1]
    H_pad = _round_up(H, LANE)

    # Batch tiling: tile is a multiple of 8 sublanes, capped at MAX_TILE_B.
    tile_b = min(MAX_TILE_B, _round_up(B, 8))
    b_pad = _round_up(B, tile_b)
    grid = (b_pad // tile_b,)

    # Flatten (same as x.view(B, -1)) and zero-pad to lane-aligned shapes.
    x_flat = x.reshape(B, IN_FEATURES).astype(jnp.float32)
    x_p = jnp.pad(x_flat, ((0, b_pad - B), (0, IN_PAD - IN_FEATURES)))

    w1p = jnp.pad(w1, ((0, IN_PAD - IN_FEATURES), (0, H_pad - H))).astype(param_dtype)
    w2p = jnp.pad(w2, ((0, H_pad - H), (0, H_pad - H))).astype(param_dtype)
    w3p = jnp.pad(w3, ((0, H_pad - H), (0, OUT_PAD - NUM_CLASSES))).astype(param_dtype)
    b1p = jnp.pad(b1, (0, H_pad - H)).reshape(1, H_pad).astype(jnp.float32)
    b2p = jnp.pad(b2, (0, H_pad - H)).reshape(1, H_pad).astype(jnp.float32)
    b3p = jnp.pad(b3, (0, OUT_PAD - NUM_CLASSES)).reshape(1, OUT_PAD).astype(jnp.float32)

    # Constant index_map -> weights/biases stay resident in VMEM across tiles.
    resident = lambda shape: pl.BlockSpec(shape, lambda i: (0, 0))

    log_probs = pl.pallas_call(
        _mlp_kernel,
        out_shape=jax.ShapeDtypeStruct((b_pad, OUT_PAD), jnp.float32),
        grid=grid,
        in_specs=[
            pl.BlockSpec((tile_b, IN_PAD), lambda i: (i, 0)),   # x streamed per tile
            resident((IN_PAD, H_pad)),
            resident((1, H_pad)),
            resident((H_pad, H_pad)),
            resident((1, H_pad)),
            resident((H_pad, OUT_PAD)),
            resident((1, OUT_PAD)),
        ],
        out_specs=pl.BlockSpec((tile_b, OUT_PAD), lambda i: (i, 0)),
        compiler_params=pltpu.CompilerParams(
            # batch tiles are independent -> shard across TCs on v7x megacore
            dimension_semantics=("parallel",),
            # explicit VMEM budget; footprint (resident weights + 2x x/out tiles)
            # is well under this even on v7x's 64 MiB part
            vmem_limit_bytes=32 * 1024 * 1024,
        ),
    )(x_p, w1p, b1p, w2p, b2p, w3p, b3p)

    logits = log_probs[:B, :NUM_CLASSES]
    # argmax of a (B, 10) array is trivial for XLA; keeping it out of the kernel
    # avoids a masked (B, 1) partial store and cross-lane XLU reductions.
    preds = jnp.argmax(logits, axis=1)
    return {"logits": logits, "preds": preds}


def init_params(key, hidden_size):
    """Deterministic synthetic parameters (shapes match the PyTorch module)."""
    k1, k2, k3, k4, k5, k6 = jax.random.split(key, 6)
    s1 = 1.0 / jnp.sqrt(IN_FEATURES)
    s2 = 1.0 / jnp.sqrt(hidden_size)
    w1 = jax.random.uniform(k1, (IN_FEATURES, hidden_size), jnp.float32, -s1, s1)
    b1 = jax.random.uniform(k2, (hidden_size,), jnp.float32, -s1, s1)
    w2 = jax.random.uniform(k3, (hidden_size, hidden_size), jnp.float32, -s2, s2)
    b2 = jax.random.uniform(k4, (hidden_size,), jnp.float32, -s2, s2)
    w3 = jax.random.uniform(k5, (hidden_size, NUM_CLASSES), jnp.float32, -s2, s2)
    b3 = jax.random.uniform(k6, (NUM_CLASSES,), jnp.float32, -s2, s2)
    return w1, b1, w2, b2, w3, b3


if __name__ == "__main__":
    key = jax.random.PRNGKey(0)
    k_params, k_x = jax.random.split(key)

    hidden_size = 32
    batch = 4

    params = init_params(k_params, hidden_size)
    x = jax.random.normal(k_x, (batch, 1, WIDTH, WIDTH), jnp.float32)

    out = simple_classifier_forward(x, *params)   # f32 weights -> exact check below
    jax.block_until_ready(out)

    # light sanity checks against pure-JAX reference
    def ref(x, w1, b1, w2, b2, w3, b3):
        xf = x.reshape(x.shape[0], -1)
        h = jnp.maximum(xf @ w1 + b1, 0.0)
        h = jnp.maximum(h @ w2 + b2, 0.0)
        z = h @ w3 + b3
        lp = jax.nn.log_softmax(z, axis=1)
        return lp, jnp.argmax(lp, axis=1)

    ref_logits, ref_preds = ref(x, *params)
    assert out["logits"].shape == (batch, NUM_CLASSES)
    assert out["preds"].shape == (batch,)
    assert jnp.allclose(out["logits"], ref_logits, atol=1e-5, rtol=1e-5)
    assert jnp.array_equal(out["preds"], ref_preds)

    print("KERNEL_OK")
</pallas_src>

<mosaic_0001>
module attributes {stable_mosaic.version = 11 : i64} {
  func.func @_mlp_kernel(%arg0: i32, %arg1: memref<8x896xf32, #tpu.memory_space<vmem>>, %arg2: memref<896x128xf32, #tpu.memory_space<vmem>>, %arg3: memref<1x128xf32, #tpu.memory_space<vmem>>, %arg4: memref<128x128xf32, #tpu.memory_space<vmem>>, %arg5: memref<1x128xf32, #tpu.memory_space<vmem>>, %arg6: memref<128x128xf32, #tpu.memory_space<vmem>>, %arg7: memref<1x128xf32, #tpu.memory_space<vmem>>, %arg8: memref<8x128xf32, #tpu.memory_space<vmem>>) attributes {dimension_semantics = [#tpu.dimension_semantics<parallel>], iteration_bounds = array<i64: 1>, scalar_prefetch = 0 : i64, scratch_operands = 0 : i64, tpu.core_type = #tpu.core_type<tc>, window_params = [{transform_indices = @transform_0, window_bounds = array<i64: 8, 896>}, {pipeline_mode = #tpu.pipeline_mode<synchronous>, transform_indices = @transform_1, window_bounds = array<i64: 896, 128>}, {pipeline_mode = #tpu.pipeline_mode<synchronous>, transform_indices = @transform_2, window_bounds = array<i64: 1, 128>}, {pipeline_mode = #tpu.pipeline_mode<synchronous>, transform_indices = @transform_3, window_bounds = array<i64: 128, 128>}, {pipeline_mode = #tpu.pipeline_mode<synchronous>, transform_indices = @transform_4, window_bounds = array<i64: 1, 128>}, {pipeline_mode = #tpu.pipeline_mode<synchronous>, transform_indices = @transform_5, window_bounds = array<i64: 128, 128>}, {pipeline_mode = #tpu.pipeline_mode<synchronous>, transform_indices = @transform_6, window_bounds = array<i64: 1, 128>}, {transform_indices = @transform_7, window_bounds = array<i64: 8, 128>}]} {
    %c0 = arith.constant 0 : index
    %c0_0 = arith.constant 0 : index
    %0 = vector.load %arg2[%c0, %c0_0] : memref<896x128xf32, #tpu.memory_space<vmem>>, vector<896x128xf32>
    %c0_1 = arith.constant 0 : index
    %c0_2 = arith.constant 0 : index
    %1 = vector.load %arg1[%c0_1, %c0_2] : memref<8x896xf32, #tpu.memory_space<vmem>>, vector<8x896xf32>
    %cst = arith.constant dense<0.000000e+00> : vector<8x128xf32>
    %2 = tpu.matmul %1, %0, %cst {dimension_numbers = #tpu.dot_dimension_numbers<[1], [0], [0], [1], [0, 0, 1, 1], [], []>} : vector<8x896xf32>, vector<896x128xf32>, vector<8x128xf32> -> vector<8x128xf32>
    %c0_3 = arith.constant 0 : index
    %c0_4 = arith.constant 0 : index
    %3 = vector.load %arg3[%c0_3, %c0_4] : memref<1x128xf32, #tpu.memory_space<vmem>>, vector<1x128xf32>
    %4 = vector.broadcast %3 : vector<1x128xf32> to vector<8x128xf32>
    %5 = arith.addf %2, %4 : vector<8x128xf32>
    %cst_5 = arith.constant 0.000000e+00 : f32
    %6 = vector.broadcast %cst_5 : f32 to vector<8x128xf32>
    %7 = arith.maximumf %5, %6 : vector<8x128xf32>
    %c0_6 = arith.constant 0 : index
    %c0_7 = arith.constant 0 : index
    %8 = vector.load %arg4[%c0_6, %c0_7] : memref<128x128xf32, #tpu.memory_space<vmem>>, vector<128x128xf32>
    %cst_8 = arith.constant dense<0.000000e+00> : vector<8x128xf32>
    %9 = tpu.matmul %7, %8, %cst_8 {dimension_numbers = #tpu.dot_dimension_numbers<[1], [0], [0], [1], [0, 0, 1, 1], [], []>} : vector<8x128xf32>, vector<128x128xf32>, vector<8x128xf32> -> vector<8x128xf32>
    %c0_9 = arith.constant 0 : index
    %c0_10 = arith.constant 0 : index
    %10 = vector.load %arg5[%c0_9, %c0_10] : memref<1x128xf32, #tpu.memory_space<vmem>>, vector<1x128xf32>
    %11 = vector.broadcast %10 : vector<1x128xf32> to vector<8x128xf32>
    %12 = arith.addf %9, %11 : vector<8x128xf32>
    %cst_11 = arith.constant 0.000000e+00 : f32
    %13 = vector.broadcast %cst_11 : f32 to vector<8x128xf32>
    %14 = arith.maximumf %12, %13 : vector<8x128xf32>
    %c0_12 = arith.constant 0 : index
    %c0_13 = arith.constant 0 : index
    %15 = vector.load %arg6[%c0_12, %c0_13] : memref<128x128xf32, #tpu.memory_space<vmem>>, vector<128x128xf32>
    %cst_14 = arith.constant dense<0.000000e+00> : vector<8x128xf32>
    %16 = tpu.matmul %14, %15, %cst_14 {dimension_numbers = #tpu.dot_dimension_numbers<[1], [0], [0], [1], [0, 0, 1, 1], [], []>} : vector<8x128xf32>, vector<128x128xf32>, vector<8x128xf32> -> vector<8x128xf32>
    %c0_15 = arith.constant 0 : index
    %c0_16 = arith.constant 0 : index
    %17 = vector.load %arg7[%c0_15, %c0_16] : memref<1x128xf32, #tpu.memory_space<vmem>>, vector<1x128xf32>
    %18 = vector.broadcast %17 : vector<1x128xf32> to vector<8x128xf32>
    %19 = arith.addf %16, %18 : vector<8x128xf32>
    %20 = tpu.iota {dimensions = array<i32: 1>} : vector<8x128xi32>
    %c10_i32 = arith.constant 10 : i32
    %21 = vector.broadcast %c10_i32 : i32 to vector<8x128xi32>
    %22 = arith.cmpi slt, %20, %21 : vector<8x128xi32>
    %cst_17 = arith.constant 0xFF800000 : f32
    %23 = vector.broadcast %cst_17 : f32 to vector<8x128xf32>
    %24 = arith.select %22, %19, %23 : vector<8x128xi1>, vector<8x128xf32>
    %cst_18 = arith.constant dense<0xFF800000> : vector<8xf32>
    %25 = vector.multi_reduction <maximumf>, %24, %cst_18 [1] : vector<8x128xf32> to vector<8xf32>
    %26 = vector.shape_cast %25 : vector<8xf32> to vector<8x1xf32>
    %27 = vector.broadcast %26 : vector<8x1xf32> to vector<8x128xf32>
    %28 = arith.subf %24, %27 : vector<8x128xf32>
    %29 = math.exp %28 : vector<8x128xf32>
    %cst_19 = arith.constant dense<0.000000e+00> : vector<8xf32>
    %30 = vector.multi_reduction <add>, %29, %cst_19 [1] : vector<8x128xf32> to vector<8xf32>
    %31 = vector.shape_cast %30 : vector<8xf32> to vector<8x1xf32>
    %32 = math.log %31 : vector<8x1xf32>
    %33 = vector.broadcast %32 : vector<8x1xf32> to vector<8x128xf32>
    %34 = arith.subf %28, %33 : vector<8x128xf32>
    %c0_20 = arith.constant 0 : index
    %c0_21 = arith.constant 0 : index
    %35 = vector.load %arg8[%c0_20, %c0_21] : memref<8x128xf32, #tpu.memory_space<vmem>>, vector<8x128xf32>
    tpu.vector_store %arg8[%c0_20, %c0_21], %34 {strides = array<i32>} : memref<8x128xf32, #tpu.memory_space<vmem>>, vector<8x128xf32>,
    return
  }
  func.func @transform_0(%arg0: i32) -> (i32, i32) {
    %c0_i32 = arith.constant 0 : i32
    %c0_i32_0 = arith.constant 0 : i32
    return %arg0, %c0_i32 : i32, i32
  }
  func.func @transform_1(%arg0: i32) -> (i32, i32) {
    %c0_i32 = arith.constant 0 : i32
    %c0_i32_0 = arith.constant 0 : i32
    %c0_i32_1 = arith.constant 0 : i32
    return %c0_i32, %c0_i32_0 : i32, i32
  }
  func.func @transform_2(%arg0: i32) -> (i32, i32) {
    %c0_i32 = arith.constant 0 : i32
    %c0_i32_0 = arith.constant 0 : i32
    %c0_i32_1 = arith.constant 0 : i32
    return %c0_i32, %c0_i32_0 : i32, i32
  }
  func.func @transform_3(%arg0: i32) -> (i32, i32) {
    %c0_i32 = arith.constant 0 : i32
    %c0_i32_0 = arith.constant 0 : i32
    %c0_i32_1 = arith.constant 0 : i32
    return %c0_i32, %c0_i32_0 : i32, i32
  }
  func.func @transform_4(%arg0: i32) -> (i32, i32) {
    %c0_i32 = arith.constant 0 : i32
    %c0_i32_0 = arith.constant 0 : i32
    %c0_i32_1 = arith.constant 0 : i32
    return %c0_i32, %c0_i32_0 : i32, i32
  }
  func.func @transform_5(%arg0: i32) -> (i32, i32) {
    %c0_i32 = arith.constant 0 : i32
    %c0_i32_0 = arith.constant 0 : i32
    %c0_i32_1 = arith.constant 0 : i32
    return %c0_i32, %c0_i32_0 : i32, i32
  }
  func.func @transform_6(%arg0: i32) -> (i32, i32) {
    %c0_i32 = arith.constant 0 : i32
    %c0_i32_0 = arith.constant 0 : i32
    %c0_i32_1 = arith.constant 0 : i32
    return %c0_i32, %c0_i32_0 : i32, i32
  }
  func.func @transform_7(%arg0: i32) -> (i32, i32) {
    %c0_i32 = arith.constant 0 : i32
    %c0_i32_0 = arith.constant 0 : i32
    return %arg0, %c0_i32 : i32, i32
  }
}

</mosaic_0001>

<bundles_post_ra>
// kernel: simple_classifier_forward.1
= control target key start
LH: loop header
LB: loop body
LE: loop exit
PB: predicated region body
PF: predicated region fallthrough
CT: control target
= control target key end

     0   :  { %vm1079_vm0 = vmmov 0   ;;  %s1616_s1 = inlined_call_operand.vmem [shape: f32[896,128], index: 1, kind: input, shape index: {}]   ;;  %s1617_s0 = inlined_call_operand.vmem [shape: f32[8,896], index: 0, kind: input, shape index: {}]   ;;  %s1618_s3 = inlined_call_operand.vmem [shape: f32[128,128], index: 3, kind: input, shape index: {}]   ;;  %s1619_s5 = inlined_call_operand.vmem [shape: f32[128,128], index: 5, kind: input, shape index: {}]   ;;  %s1620_s2 = inlined_call_operand.vmem [shape: f32[1,128], index: 2, kind: input, shape index: {}]   ;;  %s1621_s4 = inlined_call_operand.vmem [shape: f32[1,128], index: 4, kind: input, shape index: {}]   ;;  %s1622_s6 = inlined_call_operand.vmem [shape: f32[1,128], index: 6, kind: input, shape index: {}]   ;;  %s1623_s7 = inlined_call_operand.vmem [shape: f32[8,128], index: 7, kind: output, shape index: {}]  }
   0x1   :  { %v42_v0 = vld [vmem:[%s1616_s1 + $0x80] sm:$0xff]  ;;  %v43_v1 = vld [vmem:[%s1616_s1 + $0x88] sm:$0xff]  ;;  %v44_v11 = vld [vmem:[%s1616_s1 + $0x90] sm:$0xff] }
   0x2   :  { %v26_v2 = vld [vmem:[%s1616_s1] sm:$0xff]  ;;  %v903_v3 = vpack.c.bf16 %v43_v1, %v42_v0  ;;  %v27_v4 = vld [vmem:[%s1616_s1 + $0x8] sm:$0xff]  ;;  %v45_v13 = vld [vmem:[%s1616_s1 + $0x98] sm:$0xff] }
   0x3   :  { %v74_v5 = vld [vmem:[%s1616_s1 + $0x180] sm:$0xff]  ;;  %v75_v6 = vld [vmem:[%s1616_s1 + $0x188] sm:$0xff]  ;;  %v905_v7 = vpack.c.bf16 %v27_v4, %v26_v2  ;;  %v28_v14 = vld [vmem:[%s1616_s1 + $0x10] sm:$0xff]  ;;  %v907_v16 = vpack.c.bf16 %v45_v13, %v44_v11 }
   0x4   :  { %v935_v8 = vpack.c.bf16 %v75_v6, %v74_v5  ;;  %v58_v9 = vld [vmem:[%s1616_s1 + $0x100] sm:$0xff]  ;;  %v59_v10 = vld [vmem:[%s1616_s1 + $0x108] sm:$0xff]  ;;  %904 = vmatprep.subr.bf16.mxu0 %v903_v3  ;;  %v29_v15 = vld [vmem:[%s1616_s1 + $0x18] sm:$0xff] }
   0x5   :  { %v937_v12 = vpack.c.bf16 %v59_v10, %v58_v9  ;;  %906 = vmatpush3.bf16.msra.mxu0 %v905_v7  ;;  %v909_v17 = vpack.c.bf16 %v29_v15, %v28_v14  ;;  %v76_v18 = vld [vmem:[%s1616_s1 + $0x190] sm:$0xff]  ;;  %v77_v19 = vld [vmem:[%s1616_s1 + $0x198] sm:$0xff]  ;;  %v46_v23 = vld [vmem:[%s1616_s1 + $0xa0] sm:$0xff] }
   0x6   :  { %936 = vmatprep.subr.bf16.mxu1 %v935_v8  ;;  %v60_v20 = vld [vmem:[%s1616_s1 + $0x110] sm:$0xff]  ;;  %v939_v21 = vpack.c.bf16 %v77_v19, %v76_v18  ;;  %v61_v22 = vld [vmem:[%s1616_s1 + $0x118] sm:$0xff]  ;;  %v47_v24 = vld [vmem:[%s1616_s1 + $0xa8] sm:$0xff]  ;;  %908 = vmatprep.subr.bf16.mxu0 %v907_v16 }
   0x7   :  { %938 = vmatpush3.bf16.msra.mxu1 %v937_v12  ;;  %v941_v25 = vpack.c.bf16 %v61_v22, %v60_v20  ;;  %v911_v26 = vpack.c.bf16 %v47_v24, %v46_v23  ;;  %v30_v27 = vld [vmem:[%s1616_s1 + $0x20] sm:$0xff]  ;;  %v31_v28 = vld [vmem:[%s1616_s1 + $0x28] sm:$0xff]  ;;  %v48_v35 = vld [vmem:[%s1616_s1 + $0xb0] sm:$0xff] }
   0x8   :  { %v78_v29 = vld [vmem:[%s1616_s1 + $0x1a0] sm:$0xff]  ;;  %940 = vmatprep.subr.bf16.mxu1 %v939_v21  ;;  %v79_v30 = vld [vmem:[%s1616_s1 + $0x1a8] sm:$0xff]  ;;  %v913_v33 = vpack.c.bf16 %v31_v28, %v30_v27  ;;  %v49_v36 = vld [vmem:[%s1616_s1 + $0xb8] sm:$0xff] }
   0x9   :  { %v62_v31 = vld [vmem:[%s1616_s1 + $0x120] sm:$0xff]  ;;  %v63_v32 = vld [vmem:[%s1616_s1 + $0x128] sm:$0xff]  ;;  %910 = vmatpush3.bf16.msra.mxu0 %v909_v17  ;;  %v943_v34 = vpack.c.bf16 %v79_v30, %v78_v29  ;;  %v32_v37 = vld [vmem:[%s1616_s1 + $0x30] sm:$0xff]  ;;  %v915_v39 = vpack.c.bf16 %v49_v36, %v48_v35 }
   0xa   :  { %912 = vmatprep.subr.bf16.mxu0 %v911_v26  ;;  %v945_v38 = vpack.c.bf16 %v63_v32, %v62_v31  ;;  %v33_v40 = vld [vmem:[%s1616_s1 + $0x38] sm:$0xff]  ;;  %v80_v41 = vld [vmem:[%s1616_s1 + $0x1b0] sm:$0xff]  ;;  %v50_v46 = vld [vmem:[%s1616_s1 + $0xc0] sm:$0xff] }
   0xb   :  { %942 = vmatpush3.bf16.msra.mxu1 %v941_v25  ;;  %v81_v42 = vld [vmem:[%s1616_s1 + $0x1b8] sm:$0xff]  ;;  %v64_v44 = vld [vmem:[%s1616_s1 + $0x130] sm:$0xff]  ;;  %v51_v47 = vld [vmem:[%s1616_s1 + $0xc8] sm:$0xff]  ;;  %v917_v48 = vpack.c.bf16 %v33_v40, %v32_v37 }
   0xc   :  { %944 = vmatprep.subr.bf16.mxu1 %v943_v34  ;;  %v947_v43 = vpack.c.bf16 %v81_v42, %v80_v41  ;;  %v65_v45 = vld [vmem:[%s1616_s1 + $0x138] sm:$0xff]  ;;  %v82_v49 = vld [vmem:[%s1616_s1 + $0x1c0] sm:$0xff]  ;;  %v83_v50 = vld [vmem:[%s1616_s1 + $0x1c8] sm:$0xff]  ;;  %v919_v52 = vpack.c.bf16 %v51_v47, %v50_v46 }
   0xd   :  { %914 = vmatpush3.bf16.msra.mxu0 %v913_v33  ;;  %v949_v51 = vpack.c.bf16 %v65_v45, %v64_v44  ;;  %v34_v53 = vld [vmem:[%s1616_s1 + $0x40] sm:$0xff]  ;;  %v35_v54 = vld [vmem:[%s1616_s1 + $0x48] sm:$0xff]  ;;  %v951_v56 = vpack.c.bf16 %v83_v50, %v82_v49  ;;  %v52_v58 = vld [vmem:[%s1616_s1 + $0xd0] sm:$0xff] }
   0xe   :  { %916 = vmatprep.subr.bf16.mxu0 %v915_v39  ;;  %v66_v55 = vld [vmem:[%s1616_s1 + $0x140] sm:$0xff]  ;;  %v67_v57 = vld [vmem:[%s1616_s1 + $0x148] sm:$0xff]  ;;  %v53_v59 = vld [vmem:[%s1616_s1 + $0xd8] sm:$0xff]  ;;  %v921_v62 = vpack.c.bf16 %v35_v54, %v34_v53 }
   0xf   :  { %946 = vmatpush3.bf16.msra.mxu1 %v945_v38  ;;  %v84_v60 = vld [vmem:[%s1616_s1 + $0x1d0] sm:$0xff]  ;;  %v85_v61 = vld [vmem:[%s1616_s1 + $0x1d8] sm:$0xff]  ;;  %v953_v63 = vpack.c.bf16 %v67_v57, %v66_v55  ;;  %v923_v0 = vpack.c.bf16 %v53_v59, %v52_v58  ;;  %v54_v6 = vld [vmem:[%s1616_s1 + $0xe0] sm:$0xff] }
  0x10   :  { %948 = vmatprep.subr.bf16.mxu1 %v947_v43  ;;  %v36_v1 = vld [vmem:[%s1616_s1 + $0x50] sm:$0xff]  ;;  %v37_v2 = vld [vmem:[%s1616_s1 + $0x58] sm:$0xff]  ;;  %v955_v4 = vpack.c.bf16 %v85_v61, %v84_v60  ;;  %v55_v7 = vld [vmem:[%s1616_s1 + $0xe8] sm:$0xff] }
  0x11   :  { %918 = vmatpush3.bf16.msra.mxu0 %v917_v48  ;;  %v68_v3 = vld [vmem:[%s1616_s1 + $0x150] sm:$0xff]  ;;  %v69_v5 = vld [vmem:[%s1616_s1 + $0x158] sm:$0xff]  ;;  %v86_v8 = vld [vmem:[%s1616_s1 + $0x1e0] sm:$0xff]  ;;  %v925_v10 = vpack.c.bf16 %v37_v2, %v36_v1  ;;  %v927_v14 = vpack.c.bf16 %v55_v7, %v54_v6  ;;  %v1080_v1 = vmov 0.0  }
  0x12   :  { %920 = vmatprep.subr.bf16.mxu0 %v919_v52  ;;  %v87_v9 = vld [vmem:[%s1616_s1 + $0x1e8] sm:$0xff]  ;;  %v38_v11 = vld [vmem:[%s1616_s1 + $0x60] sm:$0xff]  ;;  %v957_v13 = vpack.c.bf16 %v69_v5, %v68_v3  ;;  %v56_v19 = vld [vmem:[%s1616_s1 + $0xf0] sm:$0xff] }
  0x13   :  { %950 = vmatpush3.bf16.msra.mxu1 %v949_v51  ;;  %v139_v12 = vld [vmem:[%s1617_s0 + $0x8] sm:$0xff]  ;;  %v70_v16 = vld [vmem:[%s1616_s1 + $0x160] sm:$0xff]  ;;  %v959_v18 = vpack.c.bf16 %v87_v9, %v86_v8  ;;  %v57_v20 = vld [vmem:[%s1616_s1 + $0xf8] sm:$0xff]  ;;  %v1078_v51 = vmov 0.0|0.0  }
  0x14   :  { %952 = vmatprep.subr.bf16.mxu1 %v951_v56  ;;  %v39_v15 = vld [vmem:[%s1616_s1 + $0x68] sm:$0xff]  ;;  %216 = vmatprep.mubr.f32.mxu0 %v139_v12  ;;  %v141_v21 = vld [vmem:[%s1617_s0 + $0x18] sm:$0xff]  ;;  %v88_v22 = vld [vmem:[%s1616_s1 + $0x1f0] sm:$0xff]  ;;  %v931_v26 = vpack.c.bf16 %v57_v20, %v56_v19 }
  0x15   :  { %922 = vmatpush3.bf16.msra.mxu0 %v921_v62  ;;  %v71_v17 = vld [vmem:[%s1616_s1 + $0x168] sm:$0xff]  ;;  %v89_v23 = vld [vmem:[%s1616_s1 + $0x1f8] sm:$0xff]  ;;  %286 = vmatprep.mubr.f32.mxu1 %v141_v21  ;;  %v929_v24 = vpack.c.bf16 %v39_v15, %v38_v11  ;;  %v40_v27 = vld [vmem:[%s1616_s1 + $0x70] sm:$0xff] }
  0x16   :  { %924 = vmatprep.subr.bf16.mxu0 %v923_v0  ;;  %v961_v25 = vpack.c.bf16 %v71_v17, %v70_v16  ;;  %v41_v28 = vld [vmem:[%s1616_s1 + $0x78] sm:$0xff]  ;;  %v72_v29 = vld [vmem:[%s1616_s1 + $0x170] sm:$0xff]  ;;  %v963_v30 = vpack.c.bf16 %v89_v23, %v88_v22  ;;  %v106_v32 = vld [vmem:[%s1616_s1 + $0x280] sm:$0xff] }
  0x17   :  { %954 = vmatpush3.bf16.msra.mxu1 %v953_v63  ;;  %v73_v31 = vld [vmem:[%s1616_s1 + $0x178] sm:$0xff]  ;;  %v107_v33 = vld [vmem:[%s1616_s1 + $0x288] sm:$0xff]  ;;  %v933_v34 = vpack.c.bf16 %v41_v28, %v40_v27  ;;  %v90_v37 = vld [vmem:[%s1616_s1 + $0x200] sm:$0xff] }
  0x18   :  { %956 = vmatprep.subr.bf16.mxu1 %v955_v4  ;;  %v965_v35 = vpack.c.bf16 %v73_v31, %v72_v29  ;;  %v967_v36 = vpack.c.bf16 %v107_v33, %v106_v32  ;;  %v91_v38 = vld [vmem:[%s1616_s1 + $0x208] sm:$0xff]  ;;  %v108_v39 = vld [vmem:[%s1616_s1 + $0x290] sm:$0xff]  ;;  %v109_v40 = vld [vmem:[%s1616_s1 + $0x298] sm:$0xff] }
  0x19   :  { %926 = vmatpush3.bf16.msra.mxu0 %v925_v10  ;;  %v122_v41 = vld [vmem:[%s1616_s1 + $0x300] sm:$0xff]  ;;  %v123_v42 = vld [vmem:[%s1616_s1 + $0x308] sm:$0xff]  ;;  %v969_v44 = vpack.c.bf16 %v91_v38, %v90_v37  ;;  %v140_v45 = vld [vmem:[%s1617_s0 + $0x10] sm:$0xff]  ;;  %v971_v46 = vpack.c.bf16 %v109_v40, %v108_v39 }
  0x1a   :  { %928 = vmatprep.subr.bf16.mxu0 %v927_v14  ;;  %v138_v43 = vld [vmem:[%s1617_s0] sm:$0xff]  ;;  %v92_v47 = vld [vmem:[%s1616_s1 + $0x210] sm:$0xff]  ;;  %v93_v48 = vld [vmem:[%s1616_s1 + $0x218] sm:$0xff]  ;;  %v1000_v49 = vpack.c.bf16 %v123_v42, %v122_v41 }
  0x1b   :  { %958 = vmatpush3.bf16.msra.mxu1 %v957_v13  ;;  %v110_v50 = vld [vmem:[%s1616_s1 + $0x2a0] sm:$0xff]  ;;  %v111_v52 = vld [vmem:[%s1616_s1 + $0x2a8] sm:$0xff]  ;;  %v124_v53 = vld [vmem:[%s1616_s1 + $0x310] sm:$0xff]  ;;  %v973_v55 = vpack.c.bf16 %v93_v48, %v92_v47 }
  0x1c   :  { %960 = vmatprep.subr.bf16.mxu1 %v959_v18  ;;  %v125_v54 = vld [vmem:[%s1616_s1 + $0x318] sm:$0xff]  ;;  %v94_v56 = vld [vmem:[%s1616_s1 + $0x220] sm:$0xff]  ;;  %v975_v57 = vpack.c.bf16 %v111_v52, %v110_v50  ;;  %v95_v58 = vld [vmem:[%s1616_s1 + $0x228] sm:$0xff] }
  0x1d   :  { %930 = vmatpush3.bf16.msra.mxu0 %v929_v24  ;;  %v1003_v59 = vpack.c.bf16 %v125_v54, %v124_v53  ;;  %v112_v60 = vld [vmem:[%s1616_s1 + $0x2b0] sm:$0xff]  ;;  %v113_v61 = vld [vmem:[%s1616_s1 + $0x2b8] sm:$0xff]  ;;  %v126_v62 = vld [vmem:[%s1616_s1 + $0x320] sm:$0xff]  ;;  %v977_v2 = vpack.c.bf16 %v95_v58, %v94_v56 }
  0x1e   :  { %932 = vmatprep.subr.bf16.mxu0 %v931_v26  ;;  %v127_v63 = vld [vmem:[%s1616_s1 + $0x328] sm:$0xff]  ;;  %v979_v3 = vpack.c.bf16 %v113_v61, %v112_v60  ;;  %v96_v4 = vld [vmem:[%s1616_s1 + $0x230] sm:$0xff]  ;;  %v97_v5 = vld [vmem:[%s1616_s1 + $0x238] sm:$0xff] }
  0x1f   :  { %962 = vmatpush3.bf16.msra.mxu1 %v961_v25  ;;  %v143_v0 = vld [vmem:[%s1617_s0 + $0x28] sm:$0xff]  ;;  %v1006_v6 = vpack.c.bf16 %v127_v63, %v126_v62  ;;  %v114_v7 = vld [vmem:[%s1616_s1 + $0x2c0] sm:$0xff]  ;;  %v128_v9 = vld [vmem:[%s1616_s1 + $0x330] sm:$0xff]  ;;  %v981_v11 = vpack.c.bf16 %v97_v5, %v96_v4 }
  0x20   :  { %964 = vmatprep.subr.bf16.mxu1 %v963_v30  ;;  %v115_v8 = vld [vmem:[%s1616_s1 + $0x2c8] sm:$0xff]  ;;  %v129_v10 = vld [vmem:[%s1616_s1 + $0x338] sm:$0xff]  ;;  %v98_v13 = vld [vmem:[%s1616_s1 + $0x240] sm:$0xff] }
  0x21   :  { %934 = vmatpush3.bf16.msra.mxu0 %v933_v34  ;;  %v983_v12 = vpack.c.bf16 %v115_v8, %v114_v7  ;;  %v99_v14 = vld [vmem:[%s1616_s1 + $0x248] sm:$0xff]  ;;  %v1009_v15 = vpack.c.bf16 %v129_v10, %v128_v9  ;;  %v116_v16 = vld [vmem:[%s1616_s1 + $0x2d0] sm:$0xff]  ;;  %v117_v17 = vld [vmem:[%s1616_s1 + $0x2d8] sm:$0xff] }
  0x22   :  { %968 = vmatprep.subr.bf16.mxu0 %v967_v36  ;;  %v130_v18 = vld [vmem:[%s1616_s1 + $0x340] sm:$0xff]  ;;  %v131_v19 = vld [vmem:[%s1616_s1 + $0x348] sm:$0xff]  ;;  %v985_v20 = vpack.c.bf16 %v99_v14, %v98_v13  ;;  %v987_v21 = vpack.c.bf16 %v117_v17, %v116_v16  ;;  %v100_v22 = vld [vmem:[%s1616_s1 + $0x250] sm:$0xff] }
  0x23   :  { %966 = vmatpush3.bf16.msra.mxu1 %v965_v35  ;;  %v101_v23 = vld [vmem:[%s1616_s1 + $0x258] sm:$0xff]  ;;  %v1012_v24 = vpack.c.bf16 %v131_v19, %v130_v18  ;;  %v118_v25 = vld [vmem:[%s1616_s1 + $0x2e0] sm:$0xff]  ;;  %v119_v26 = vld [vmem:[%s1616_s1 + $0x2e8] sm:$0xff] }
  0x24   :  { %999 = vmatprep.subr.bf16.mxu1 %v1078_v51  ;;  %217 = vmatmul.mubr.f32.vlgmr.msra.gmra.mrb[0].mxu0 %v138_v43  ;;  %v132_v27 = vld [vmem:[%s1616_s1 + $0x350] sm:$0xff]  ;;  %v133_v28 = vld [vmem:[%s1616_s1 + $0x358] sm:$0xff]  ;;  %v989_v29 = vpack.c.bf16 %v101_v23, %v100_v22  ;;  %v991_v30 = vpack.c.bf16 %v119_v26, %v118_v25  ;;  %v102_v31 = vld [vmem:[%s1616_s1 + $0x260] sm:$0xff] }
  0x25   :  { %970 = vmatpush3.bf16.msra.mxu0 %v969_v44  ;;  %356 = vmatprep.mubr.f32.mxu0 %v143_v0  ;;  %v103_v32 = vld [vmem:[%s1616_s1 + $0x268] sm:$0xff]  ;;  %v1015_v33 = vpack.c.bf16 %v133_v28, %v132_v27  ;;  %v120_v34 = vld [vmem:[%s1616_s1 + $0x2f0] sm:$0xff]  ;;  %v121_v35 = vld [vmem:[%s1616_s1 + $0x2f8] sm:$0xff] }
  0x26   :  { %287 = vmatmul.mubr.f32.vlgmr.msra.gmra.mrb[0].mxu1 %v140_v45  ;;  %972 = vmatprep.subr.bf16.mxu0 %v971_v46  ;;  %v134_v36 = vld [vmem:[%s1616_s1 + $0x360] sm:$0xff]  ;;  %v135_v37 = vld [vmem:[%s1616_s1 + $0x368] sm:$0xff]  ;;  %v993_v38 = vpack.c.bf16 %v103_v32, %v102_v31  ;;  %v995_v39 = vpack.c.bf16 %v121_v35, %v120_v34  ;;  %v104_v40 = vld [vmem:[%s1616_s1 + $0x270] sm:$0xff] }
  0x27   :  { %1001 = vmatpush3.bf16.msra.mxu1 %v1000_v49  ;;  %830 = vmatprep.mubr.msk.f32.mxu1 %vm1079_vm0, %v1080_v1  ;;  %v105_v41 = vld [vmem:[%s1616_s1 + $0x278] sm:$0xff]  ;;  %v1018_v42 = vpack.c.bf16 %v135_v37, %v134_v36  ;;  %v136_v43 = vld [vmem:[%s1616_s1 + $0x370] sm:$0xff]  ;;  %v142_v47 = vld [vmem:[%s1617_s0 + $0x20] sm:$0xff] }
  0x28   :  { %1002 = vmatprep.subr.bf16.mxu1 %v1078_v51  ;;  %v137_v44 = vld [vmem:[%s1616_s1 + $0x378] sm:$0xff]  ;;  %v997_v45 = vpack.c.bf16 %v105_v41, %v104_v40  ;;  %v144_v48 = vld [vmem:[%s1617_s0 + $0x30] sm:$0xff]  ;;  %v433_v49 = vld [vmem:[%s1618_s3] sm:$0xff] }
  0x29   :  { %974 = vmatpush3.bf16.msra.mxu0 %v973_v55  ;;  %v1021_v46 = vpack.c.bf16 %v137_v44, %v136_v43  ;;  %v434_v50 = vld [vmem:[%s1618_s3 + $0x8] sm:$0xff]  ;;  %v435_v52 = vld [vmem:[%s1618_s3 + $0x10] sm:$0xff]  ;;  %v436_v54 = vld [vmem:[%s1618_s3 + $0x18] sm:$0xff] }
  0x2a   :  { %976 = vmatprep.subr.bf16.mxu0 %v975_v57  ;;  %v1024_v53 = vpack.c.bf16 %v434_v50, %v433_v49  ;;  %v1027_v55 = vpack.c.bf16 %v436_v54, %v435_v52  ;;  %v437_v56 = vld [vmem:[%s1618_s3 + $0x20] sm:$0xff]  ;;  %v438_v57 = vld [vmem:[%s1618_s3 + $0x28] sm:$0xff]  ;;  %v440_v60 = vld [vmem:[%s1618_s3 + $0x38] sm:$0xff] }
  0x2b   :  { %1004 = vmatpush3.bf16.msra.mxu1 %v1003_v59  ;;  %v1030_v58 = vpack.c.bf16 %v438_v57, %v437_v56  ;;  %v439_v59 = vld [vmem:[%s1618_s3 + $0x30] sm:$0xff]  ;;  %v441_v62 = vld [vmem:[%s1618_s3 + $0x40] sm:$0xff]  ;;  %v442_v63 = vld [vmem:[%s1618_s3 + $0x48] sm:$0xff]  ;;  %v620_v56 = vlaneseq }
  0x2c   :  { %1005 = vmatprep.subr.bf16.mxu1 %v1078_v51  ;;  %v1033_v61 = vpack.c.bf16 %v440_v60, %v439_v59  ;;  %v1036_v0 = vpack.c.bf16 %v442_v63, %v441_v62  ;;  %v445_v4 = vld [vmem:[%s1618_s3 + $0x60] sm:$0xff]  ;;  %v446_v5 = vld [vmem:[%s1618_s3 + $0x68] sm:$0xff]  ;;  %v447_v7 = vld [vmem:[%s1618_s3 + $0x70] sm:$0xff] }
  0x2d   :  { %978 = vmatpush3.bf16.msra.mxu0 %v977_v2  ;;  %v444_v2 = vld [vmem:[%s1618_s3 + $0x58] sm:$0xff]  ;;  %v527_v10 = vld [vmem:[%s1619_s5] sm:$0xff]  ;;  %v532_v17 = vld [vmem:[%s1619_s5 + $0x28] sm:$0xff]  ;;  %v621_v57 = vand.u32 127, %v620_v56 }
  0x2e   :  { %980 = vmatprep.subr.bf16.mxu0 %v979_v3  ;;  %v448_v8 = vld [vmem:[%s1618_s3 + $0x78] sm:$0xff]  ;;  %v531_v16 = vld [vmem:[%s1619_s5 + $0x20] sm:$0xff]  ;;  %v533_v19 = vld [vmem:[%s1619_s5 + $0x30] sm:$0xff] }
  0x2f   :  { %1007 = vmatpush3.bf16.msra.mxu1 %v1006_v6  ;;  %v1042_v6 = vpack.c.bf16 %v446_v5, %v445_v4  ;;  %v1045_v9 = vpack.c.bf16 %v448_v8, %v447_v7  ;;  %v530_v14 = vld [vmem:[%s1619_s5 + $0x18] sm:$0xff]  ;;  %v1054_v18 = vpack.c.bf16 %v532_v17, %v531_v16  ;;  %v535_v22 = vld [vmem:[%s1619_s5 + $0x40] sm:$0xff]  ;;  %v536_v23 = vld [vmem:[%s1619_s5 + $0x48] sm:$0xff]  ;;  %vm622_vm1 = vcmp.lt.s32.totalorder %v621_v57, 10 }
  0x30   :  { %1008 = vmatprep.subr.bf16.mxu1 %v1078_v51  ;;  %v537_v25 = vld [vmem:[%s1619_s5 + $0x50] sm:$0xff]  ;;  %v538_v26 = vld [vmem:[%s1619_s5 + $0x58] sm:$0xff]  ;;  %v539_v28 = vld [vmem:[%s1619_s5 + $0x60] sm:$0xff] }
  0x31   :  { %982 = vmatpush3.bf16.msra.mxu0 %v981_v11  ;;  %v528_v11 = vld [vmem:[%s1619_s5 + $0x8] sm:$0xff]  ;;  %v1063_v27 = vpack.c.bf16 %v538_v26, %v537_v25  ;;  %v639_v32 = vld [vmem:[%s1620_s2] ss:$0 sm:$0xff] }
  0x32   :  { %984 = vmatprep.subr.bf16.mxu0 %v983_v12  ;;  %v529_v12 = vld [vmem:[%s1619_s5 + $0x10] sm:$0xff]  ;;  %v1048_v13 = vpack.c.bf16 %v528_v11, %v527_v10  ;;  %v640_v50 = vld [vmem:[%s1621_s4] ss:$0 sm:$0xff] }
  0x33   :  { %1010 = vmatpush3.bf16.msra.mxu1 %v1009_v15  ;;  %v1051_v15 = vpack.c.bf16 %v530_v14, %v529_v12 }
  0x34   :  { %1011 = vmatprep.subr.bf16.mxu1 %v1078_v51 }
  0x35   :  { %986 = vmatpush3.bf16.msra.mxu0 %v985_v20  ;;  %v534_v20 = vld [vmem:[%s1619_s5 + $0x38] sm:$0xff] }
  0x36   :  { %988 = vmatprep.subr.bf16.mxu0 %v987_v21  ;;  %v1057_v21 = vpack.c.bf16 %v534_v20, %v533_v19 }
  0x37   :  { %1013 = vmatpush3.bf16.msra.mxu1 %v1012_v24  ;;  %v1060_v24 = vpack.c.bf16 %v536_v23, %v535_v22 }
  0x38   :  { %1014 = vmatprep.subr.bf16.mxu1 %v1078_v51 }
  0x39   :  { %990 = vmatpush3.bf16.msra.mxu0 %v989_v29  ;;  %v540_v29 = vld [vmem:[%s1619_s5 + $0x68] sm:$0xff] }
  0x3a   :  { %992 = vmatprep.subr.bf16.mxu0 %v991_v30  ;;  %v1066_v30 = vpack.c.bf16 %v540_v29, %v539_v28 }
  0x3b   :  { %1016 = vmatpush3.bf16.msra.mxu1 %v1015_v33 }
  0x3c   :  { %1017 = vmatprep.subr.bf16.mxu1 %v1078_v51 }
  0x3d   :  { %994 = vmatpush3.bf16.msra.mxu0 %v993_v38 }
  0x3e   :  { %996 = vmatprep.subr.bf16.mxu0 %v995_v39 }
  0x3f   :  { %1019 = vmatpush3.bf16.msra.mxu1 %v1018_v42 }
  0x40   :  { %1020 = vmatprep.subr.bf16.mxu1 %v1078_v51 }
  0x41   :  { %998 = vmatpush3.bf16.msra.mxu0 %v997_v45 }
  0x42   :  { %1023 = vmatprep.subr.bf16.mxu0 %v1078_v51 }
  0x43   :  { %1022 = vmatpush3.bf16.msra.mxu1 %v1021_v46 }
  0x44   :  { %1047 = vmatprep.subr.bf16.mxu1 %v1078_v51  ;;  %357 = vmatmul.mubr.f32.vlgmr.msra.gmra.mrb[2].mxu0 %v142_v47  ;;  %v541_v47 = vld [vmem:[%s1619_s5 + $0x70] sm:$0xff] }
  0x45   :  { %865 = vmatprep.mubr.msk.f32.mxu0 %vm1079_vm0, %v1080_v1  ;;  %1025 = vmatpush3.bf16.msra.mxu0 %v1024_v53 }
  0x46   :  { %831 = vmatmul.mubr.f32.vlgmr.msra.gmra.mrb[2].mxu1 %v144_v48  ;;  %1026 = vmatprep.subr.bf16.mxu0 %v1078_v51  ;;  %v542_v48 = vld [vmem:[%s1619_s5 + $0x78] sm:$0xff] }
  0x47   :  { %900 = vmatprep.mubr.msk.f32.mxu1 %vm1079_vm0, %v1080_v1  ;;  %v443_v1 = vld [vmem:[%s1618_s3 + $0x50] sm:$0xff]  ;;  %1049 = vmatpush3.bf16.msra.mxu1 %v1048_v13  ;;  %v1069_v49 = vpack.c.bf16 %v542_v48, %v541_v47 }
  0x48   :  { %v1039_v3 = vpack.c.bf16 %v444_v2, %v443_v1  ;;  %1050 = vmatprep.subr.bf16.mxu1 %v1078_v51 }
  0x49   :  { %1028 = vmatpush3.bf16.msra.mxu0 %v1027_v55 }
  0x4a   :  { %1029 = vmatprep.subr.bf16.mxu0 %v1078_v51 }
  0x4b   :  { %1052 = vmatpush3.bf16.msra.mxu1 %v1051_v15 }
  0x4c   :  { %1053 = vmatprep.subr.bf16.mxu1 %v1078_v51 }
  0x4d   :  { %1031 = vmatpush3.bf16.msra.mxu0 %v1030_v58  ;;  %v641_v58 = vld [vmem:[%s1622_s6] ss:$0 sm:$0xff] }
  0x4e   :  { %1032 = vmatprep.subr.bf16.mxu0 %v1078_v51 }
  0x4f   :  { %1055 = vmatpush3.bf16.msra.mxu1 %v1054_v18 }
  0x50   :  { %1056 = vmatprep.subr.bf16.mxu1 %v1078_v51 }
  0x51   :  { %1034 = vmatpush3.bf16.msra.mxu0 %v1033_v61 }
  0x52   :  { %1035 = vmatprep.subr.bf16.mxu0 %v1078_v51 }
  0x53   :  { %1058 = vmatpush3.bf16.msra.mxu1 %v1057_v21 }
  0x54   :  { %1059 = vmatprep.subr.bf16.mxu1 %v1078_v51 }
  0x55   :  { %1037 = vmatpush3.bf16.msra.mxu0 %v1036_v0 }
  0x56   :  { %1038 = vmatprep.subr.bf16.mxu0 %v1078_v51 }
  0x57   :  { %1061 = vmatpush3.bf16.msra.mxu1 %v1060_v24 }
  0x58   :  { %1062 = vmatprep.subr.bf16.mxu1 %v1078_v51 }
  0x59   :  { %1040 = vmatpush3.bf16.msra.mxu0 %v1039_v3 }
  0x5a   :  { %1041 = vmatprep.subr.bf16.mxu0 %v1078_v51 }
  0x5b   :  { %1064 = vmatpush3.bf16.msra.mxu1 %v1063_v27 }
  0x5c   :  { %1065 = vmatprep.subr.bf16.mxu1 %v1078_v51 }
  0x5d   :  { %1043 = vmatpush3.bf16.msra.mxu0 %v1042_v6 }
  0x5e   :  { %1044 = vmatprep.subr.bf16.mxu0 %v1078_v51 }
  0x5f   :  { %1067 = vmatpush3.bf16.msra.mxu1 %v1066_v30 }
  0x60   :  { %1068 = vmatprep.subr.bf16.mxu1 %v1078_v51 }
  0x61   :  { %1046 = vmatpush3.bf16.msra.mxu0 %v1045_v9 }
  0x63   :  { %1070 = vmatpush3.bf16.msra.mxu1 %v1069_v49 }
  0xf7   :  { %v674_v31 = vpop.f32.mrb[0].mxu0 }
  0xf8   :  { %v675_v33 = vpop.f32.mrb[1].mxu0 }
  0xf9   :  { %v709_v34 = vpop.f32.mrb[0].mxu1  ;;  %v676_v35 = vadd.f32 %v675_v33, %v674_v31 }
  0xfa   :  { %v710_v36 = vpop.f32.mrb[1].mxu1 }
  0xfb   :  { %v711_v37 = vadd.f32 %v710_v36, %v709_v34  ;;  %v219_v38 = vadd.f32 %v676_v35, %v639_v32 }
  0xfd   :  { %v289_v39 = vadd.f32 %v711_v37, %v219_v38 }
 0x117   :  { %v744_v40 = vpop.f32.mrb[2].mxu0 }
 0x118   :  { %v745_v41 = vpop.f32.mrb[3].mxu0 }
 0x119   :  { %v428_v42 = vpop.f32.mrb[2].mxu1  ;;  %v746_v43 = vadd.f32 %v745_v41, %v744_v40 }
 0x11a   :  { %v832_v44 = vpop.f32.mrb[3].mxu1 }
 0x11b   :  { %v359_v45 = vadd.f32 %v746_v43, %v289_v39 }
 0x11d   :  { %v429_v46 = vadd.f32 %v428_v42, %v359_v45 }
 0x11f   :  { %v432_v51 = vmax.f32 %v429_v46, 0.0 }
 0x121   :  { %866 = vmatmul.mubr.f32.vlgmr.msra.gmra.mrb[4].mxu0 %v432_v51 }
 0x1f4   :  { %v522_v52 = vpop.f32.mrb[4].mxu0 }
 0x1f5   :  { %v523_v53 = vadd.f32 %v640_v50, %v522_v52  ;;  %v867_v54 = vpop.f32.mrb[5].mxu0 }
 0x1f7   :  { %v526_v55 = vmax.f32 %v523_v53, 0.0 }
 0x1f9   :  { %901 = vmatmul.mubr.f32.vlgmr.msra.gmra.mrb[4].mxu1 %v526_v55 }
 0x2cc   :  { %v616_v59 = vpop.f32.mrb[4].mxu1 }
 0x2cd   :  { %v617_v60 = vadd.f32 %v641_v58, %v616_v59  ;;  %v902_v61 = vpop.f32.mrb[5].mxu1 }
 0x2cf   :  { %v623_v62 = vsel %vm622_vm1, %v617_v60, -inf }
 0x2d0   :  { %624 = vmax.xlane.f32.xlu0 %v623_v62 }
 0x35d   :  { %v625_v63 = vpop.xlane.xlu0 %624 }
 0x35e   :  { %v626_v0 = vsub.f32 %v623_v62, %v625_v63 }
 0x360   :  { %v627_v1 = vmul.f32 1.442695, %v626_v0 }
 0x362   :  { %1074 = vpow2.f32 %v627_v1 }
 0x36c   :  { %v1075_v2 = vpop.eup %1074 }
 0x36d   :  { %629 = vadd.xlane.f32.xlu0 %v1075_v2 }
 0x3fa   :  { %v630_v3 = vpop.xlane.xlu0 %629 }
 0x3fb   :  { %1076 = vlog2.f32 %v630_v3 }
 0x405   :  { %v1077_v4 = vpop.eup %1076 }
 0x406   :  { %v632_v5 = vmul.f32 0.6931472, %v1077_v4 }
 0x408   :  { %v633_v6 = vsub.f32 %v626_v0, %v632_v5 }
 0x40a   :  { %634 = vst [vmem:[%s1623_s7] sm:$0xff] %v633_v6 }

</bundles_post_ra>
